<compile_context>
chip_gen: v7x
topology: tpu7x:2x2x1
jax: 0.10.0
libtpu: 0.0.40
codegen_flags: <defaults>
</compile_context>

<pallas_src>
import math

import jax
import jax.numpy as jnp
from jax.experimental import pallas as pl
from jax.experimental.pallas import tpu as pltpu


def _droppath_kernel(scale_ref, x_ref, o_ref):
    # scale_ref: (tb, 1[, 1]) f32, scale[b] = mask[b] / keep_prob
    # x_ref/o_ref: (tb[, tn], td) tile of the activations (original layout).
    o_ref[...] = x_ref[...] * scale_ref[...].astype(x_ref.dtype)


def _cdiv(a, b):
    return -(-a // b)


def _round_down(v, m):
    return max(m, (v // m) * m)


def _device_config():
    """Returns (target_block_bytes, vmem_limit_bytes_or_None, min_grid_steps)."""
    try:
        kind = jax.devices()[0].device_kind.lower()
    except Exception:  # pragma: no cover - be conservative if sniffing fails
        kind = ""
    if "v7" in kind:
        # 64 MiB physical VMEM / 2 TCs; raise the scoped limit explicitly and
        # ask for >=4 grid steps so both cores get work.
        return 8 << 20, 56 << 20, 4
    if "v6" in kind:
        return 4 << 20, None, 1      # 32 MiB scoped default: 4x4 MiB fits.
    return 2 << 20, None, 1          # v5e / unknown: stay under 16 MiB scoped.


def _sublane_multiple(itemsize):
    return {4: 8, 2: 16, 1: 32}.get(itemsize, 8)


def _choose_tiles(shape, itemsize, target_bytes, min_steps):
    """Pick a block shape for a rank-2 (B, D) or rank-3 (B, N, D) activation.

    Lane tile is a multiple of 128 (or full extent), sublane tile is aligned to
    the dtype packing (or full extent); tail blocks are masked via pl.cdiv.
    """
    sub = _sublane_multiple(itemsize)
    target_elems = max(sub * 128, target_bytes // itemsize)
    D = shape[-1]

    # Lane (minor) dim: full extent when `sub` rows of it fit the byte target,
    # otherwise the largest multiple of 128 that does.
    max_td = _round_down(max(target_elems // sub, 128), 128)
    td = D if D <= max_td else _round_down(min(max_td, D), 128)

    # Second-minor dim (tokens N for rank-3, batch B for rank-2).
    S = shape[-2]
    row_budget = max(sub, target_elems // td)
    ts = S if S <= row_budget else _round_down(row_budget, sub)

    if len(shape) == 2:
        tiles = [ts, td]
    else:
        B = shape[0]
        tb = max(1, min(B, target_elems // (ts * td)))
        tiles = [tb, ts, td]

    # Make sure multi-core chips (v7x) have enough grid steps to shard.
    def steps():
        return math.prod(_cdiv(s, t) for s, t in zip(shape, tiles))

    while steps() < min_steps:
        if len(tiles) == 3 and tiles[0] > 1:
            tiles[0] = max(1, tiles[0] // 2)
        elif tiles[-2] > sub:
            tiles[-2] = _round_down(tiles[-2] // 2, sub)
        elif tiles[-1] > 128:
            tiles[-1] = _round_down(tiles[-1] // 2, 128)
        else:
            break
    return tuple(tiles)


def drop_path(x, *, drop_prob: float, key, training: bool = True,
              donate_x: bool = False):
    """Stochastic depth per sample, matching the PyTorch DropPath forward."""
    if drop_prob == 0.0 or not training:
        return x

    keep_prob = 1.0 - drop_prob
    B = x.shape[0]

    # mask = floor(keep_prob + U[0,1)); fold the 1/keep_prob scale in as well.
    mask = jnp.floor(keep_prob + jax.random.uniform(key, (B,), dtype=jnp.float32))
    scale = mask / jnp.float32(keep_prob)

    if x.ndim < 2:
        # Rank-1 activations are negligible; no kernel needed.
        return (x * scale.astype(x.dtype)).reshape(x.shape)

    orig_shape = x.shape
    if x.ndim <= 3:
        xk = x                                   # original layout, no relayout
    else:
        # TODO(synk): rank>3 collapse of the middle dims may relayout if the
        # second-minor dim is not a sublane multiple; ViT token tensors are 3-D.
        xk = x.reshape(B, -1, x.shape[-1])

    target_bytes, vmem_limit, min_steps = _device_config()
    tiles = _choose_tiles(xk.shape, x.dtype.itemsize, target_bytes, min_steps)
    grid = tuple(_cdiv(s, t) for s, t in zip(xk.shape, tiles))

    if xk.ndim == 2:
        scale_k = scale.reshape(B, 1)
        scale_block = (tiles[0], 1)
        scale_map = lambda i, j: (i, 0)
        x_map = lambda i, j: (i, j)
    else:
        scale_k = scale.reshape(B, 1, 1)
        scale_block = (tiles[0], 1, 1)
        scale_map = lambda i, j, k: (i, 0, 0)
        x_map = lambda i, j, k: (i, j, k)

    cp_kwargs = dict(dimension_semantics=("parallel",) * len(grid))
    if vmem_limit is not None:
        cp_kwargs["vmem_limit_bytes"] = int(vmem_limit)

    out = pl.pallas_call(
        _droppath_kernel,
        out_shape=jax.ShapeDtypeStruct(xk.shape, x.dtype),
        grid=grid,
        in_specs=[
            pl.BlockSpec(scale_block, scale_map),   # per-sample scale
            pl.BlockSpec(tiles, x_map),             # activation tile
        ],
        out_specs=pl.BlockSpec(tiles, x_map),
        compiler_params=pltpu.CompilerParams(**cp_kwargs),
        # Reuse x's buffer for the output when the caller no longer needs x.
        input_output_aliases={1: 0} if donate_x else {},
    )(scale_k, xk)

    return out.reshape(orig_shape)


def _reference(x, drop_prob, key):
    keep_prob = 1.0 - drop_prob
    mask = jnp.floor(
        keep_prob + jax.random.uniform(key, (x.shape[0],), dtype=jnp.float32))
    bshape = (x.shape[0],) + (1,) * (x.ndim - 1)
    out = (x.astype(jnp.float32) / keep_prob) * mask.reshape(bshape)
    return out.astype(x.dtype)


if __name__ == "__main__":
    root = jax.random.PRNGKey(0)
    drop_prob = 0.25

    # Small shapes exercising the 3-D (ViT tokens), 2-D, rank-4, and bf16 paths.
    cases = [
        ((2, 8, 32), jnp.float32),
        ((4, 64), jnp.float32),
        ((2, 4, 16, 16), jnp.float32),
        ((2, 16, 128), jnp.bfloat16),
    ]
    for idx, (shape, dtype) in enumerate(cases):
        kx, kmask = jax.random.split(jax.random.fold_in(root, idx))
        x = jax.random.normal(kx, shape, dtype=jnp.float32).astype(dtype)

        out = jax.block_until_ready(
            drop_path(x, drop_prob=drop_prob, key=kmask, training=True))
        ref = _reference(x, drop_prob, kmask)
        assert out.shape == x.shape and out.dtype == x.dtype
        if dtype == jnp.float32:
            atol, rtol = 1e-6, 1e-5
        else:
            atol, rtol = 1e-2, 2e-2
        assert jnp.allclose(out.astype(jnp.float32), ref.astype(jnp.float32),
                            atol=atol, rtol=rtol), f"mismatch at {shape} {dtype}"

        # Eval / drop_prob=0 paths are identity.
        assert jnp.allclose(
            drop_path(x, drop_prob=drop_prob, key=kmask, training=False)
            .astype(jnp.float32), x.astype(jnp.float32))
        assert jnp.allclose(
            drop_path(x, drop_prob=0.0, key=kmask, training=True)
            .astype(jnp.float32), x.astype(jnp.float32))

    print("KERNEL_OK")
</pallas_src>

<mosaic_0001>
module attributes {stable_mosaic.version = 11 : i64} {
  func.func @_droppath_kernel(%arg0: i32, %arg1: i32, %arg2: i32, %arg3: memref<2x1x1xf32, #tpu.memory_space<vmem>>, %arg4: memref<2x8x32xf32, #tpu.memory_space<vmem>>, %arg5: memref<2x8x32xf32, #tpu.memory_space<vmem>>) attributes {dimension_semantics = [#tpu.dimension_semantics<parallel>, #tpu.dimension_semantics<parallel>, #tpu.dimension_semantics<parallel>], iteration_bounds = array<i64: 1, 1, 1>, scalar_prefetch = 0 : i64, scratch_operands = 0 : i64, tpu.core_type = #tpu.core_type<tc>, window_params = [{transform_indices = @transform_0, window_bounds = array<i64: 2, 1, 1>}, {transform_indices = @transform_1, window_bounds = array<i64: 2, 8, 32>}, {transform_indices = @transform_2, window_bounds = array<i64: 2, 8, 32>}]} {
    %c0 = arith.constant 0 : index
    %c0_0 = arith.constant 0 : index
    %c0_1 = arith.constant 0 : index
    %0 = vector.load %arg4[%c0, %c0_0, %c0_1] : memref<2x8x32xf32, #tpu.memory_space<vmem>>, vector<2x8x32xf32>
    %c0_2 = arith.constant 0 : index
    %c0_3 = arith.constant 0 : index
    %c0_4 = arith.constant 0 : index
    %1 = vector.load %arg3[%c0_2, %c0_3, %c0_4] : memref<2x1x1xf32, #tpu.memory_space<vmem>>, vector<2x1x1xf32>
    %2 = vector.broadcast %1 : vector<2x1x1xf32> to vector<2x8x32xf32>
    %3 = arith.mulf %0, %2 : vector<2x8x32xf32>
    %c0_5 = arith.constant 0 : index
    %c0_6 = arith.constant 0 : index
    %c0_7 = arith.constant 0 : index
    %4 = vector.load %arg5[%c0_5, %c0_6, %c0_7] : memref<2x8x32xf32, #tpu.memory_space<vmem>>, vector<2x8x32xf32>
    tpu.vector_store %arg5[%c0_5, %c0_6, %c0_7], %3 {strides = array<i32>} : memref<2x8x32xf32, #tpu.memory_space<vmem>>, vector<2x8x32xf32>,
    return
  }
  func.func @transform_0(%arg0: i32, %arg1: i32, %arg2: i32) -> (i32, i32, i32) {
    %c0_i32 = arith.constant 0 : i32
    %c0_i32_0 = arith.constant 0 : i32
    %c0_i32_1 = arith.constant 0 : i32
    return %arg0, %c0_i32, %c0_i32_0 : i32, i32, i32
  }
  func.func @transform_1(%arg0: i32, %arg1: i32, %arg2: i32) -> (i32, i32, i32) {
    %c0_i32 = arith.constant 0 : i32
    return %arg0, %arg1, %arg2 : i32, i32, i32
  }
  func.func @transform_2(%arg0: i32, %arg1: i32, %arg2: i32) -> (i32, i32, i32) {
    %c0_i32 = arith.constant 0 : i32
    return %arg0, %arg1, %arg2 : i32, i32, i32
  }
}

</mosaic_0001>

<bundles_post_ra>
// kernel: tpu_custom_call.1
= control target key start
LH: loop header
LB: loop body
LE: loop exit
PB: predicated region body
PF: predicated region fallthrough
CT: control target
= control target key end

     0   :  { %7 = vsyncpa [#allocation3], 0  ;;  %s182_s0 = inlined_call_operand.vmem [shape: f32[2,1,1], index: 0, kind: input, shape index: {}]   ;;  %s183_s1 = inlined_call_operand.hbm [shape: f32[2,8,32], index: 1, kind: input, shape index: {}]   ;;  %s184_s2 = inlined_call_operand.hbm [shape: f32[2,8,32], index: 2, kind: output, shape index: {}]  }
   0x1   :  { %8 = vsyncpa [#allocation4], 0  ;;  %s126_s9 = smov [#allocation2]   ;;  %s78_s13 = scalar_lea.hbm %s183_s1, 256 }
   0x2   :  { %s16_s10 = sshll.u32 %s126_s9, 4  ;;  %p79_p0 = scmp.ne.s32.totalorder %s183_s1, %s78_s13  ;;  %s17_s10 = int_to_ptr.vmem [resolvable:$true] %s16_s10 }
   0x3   :  { %p82_p1 = scmp.lt.u32.totalorder %s78_s13, %s183_s1 }
   0x5   :  { %p84_p2 = pnand %p82_p1, %p79_p0 }
   0x7   :  { %87 = shalt.err (!%p84_p2)
}
   0x8   :  { %s88_s18 = scalar_lea.vmem %s17_s10, 256  ;;  %p93_p4 = scmp.lt.s32.totalorder %s17_s10, %s17_s10 }
   0x9   :  { %p89_p3 = scmp.ne.s32.totalorder %s17_s10, %s88_s18  ;;  %p94_p5 = scmp.lt.s32.totalorder %s88_s18, %s88_s18 }
   0xb   :  { %p95_p6 = por %p94_p5, %p93_p4 }
   0xd   :  { %p96_p7 = pnand %p95_p6, %p89_p3 }
   0xf   :  { %99 = shalt.err (!%p96_p7)
}
  0x10   :  { %s127_s19 = smov 128   ;;  %s128_s20 = smov 8  }
  0x11   :  { %22 = dma.hbm_to_vmem [thread:$0]  %s183_s1, 256, %s17_s10, [#allocation3], %s127_s19, %s127_s19, %s128_s20  }
  0x12   :  { %122 = dma.done.wait [#allocation3], 256  }
  0x13   :  { %123 = vsyncadd [#allocation3], 4294967040  ;;  %v129_v0 = vmov 0   ;;  %v70_v1 = vld [vmem:[%s182_s0] ss:$0 sm:$0xff]  ;;  %vm50_vm0 = vcmask 261120  }
  0x14   :  { %77 = vset.pattern.permute.xlu0 %v129_v0  ;;  %v71_v2 = vld [vmem:[%s182_s0 + $0x1] ss:$0 sm:$0xff]  ;;  %v27_v6 = vld [vmem:[#allocation2 + $0x8] sm:$0xff]  ;;  %s130_s1 = smov [#allocation5]  }
  0x15   :  { %41 = vperm.xlu0 %77, %v70_v1   ;;  %v26_v3 = vld [vmem:[#allocation2] sm:$0xff]  ;;  %s58_s27 = sshll.u32 %s130_s1, 4  ;;  %s59_s27 = int_to_ptr.vmem [resolvable:$true] %s58_s27 }
  0x16   :  { %s100_s28 = scalar_lea.vmem %s59_s27, 256  ;;  %p105_p9 = scmp.lt.s32.totalorder %s59_s27, %s59_s27 }
  0x17   :  { %p101_p8 = scmp.ne.s32.totalorder %s59_s27, %s100_s28  ;;  %p106_p10 = scmp.lt.s32.totalorder %s100_s28, %s100_s28 }
  0x19   :  { %45 = vperm.xlu0 %77, %v71_v2   ;;  %p107_p11 = por %p106_p10, %p105_p9 }
  0x1b   :  { %p108_p12 = pnand %p107_p11, %p101_p8 }
  0x94   :  { %v42_v4 = vpop.permute.xlu0 %41 }
  0x95   :  { %v48_v5 = vmul.f32 %v42_v4, %v26_v3 }
  0x97   :  { %51 = vst.msk [vmem:[#allocation5] sm:$0xff] %vm50_vm0, %v48_v5 }
  0x98   :  { %v46_v7 = vpop.permute.xlu0 %45 }
  0x99   :  { %v49_v8 = vmul.f32 %v46_v7, %v27_v6 }
  0x9b   :  { %52 = vst.msk [vmem:[#allocation5 + $0x8] sm:$0xff] %vm50_vm0, %v49_v8 }
  0x9c   :  { %111 = shalt.err (!%p108_p12)
}
  0x9d   :  { %s112_s30 = scalar_lea.hbm %s184_s2, 256 }
  0x9e   :  { %p113_p13 = scmp.ne.s32.totalorder %s184_s2, %s112_s30  ;;  %p116_p0 = scmp.lt.u32.totalorder %s112_s30, %s184_s2 }
  0xa0   :  { %p118_p1 = pnand %p116_p0, %p113_p13 }
  0xa2   :  { %121 = shalt.err (!%p118_p1)
}
  0xa3   :  { %64 = dma.vmem_to_hbm [thread:$0]  %s59_s27, 256, %s184_s2, [#allocation4], %s127_s19, %s127_s19, %s128_s20  }
  0xa4   :  { %124 = dma.done.wait [#allocation4], 256  }
  0xa5   :  { %125 = vsyncadd [#allocation4], 4294967040 }
  0xa6   :  { %68 = vsyncpa [#allocation3], 1 }
  0xa7   :  { %69 = vsyncpa [#allocation4], 1 }

</bundles_post_ra>
